<compile_context>
chip_gen: v6e
topology: v6e:2x2x1
jax: 0.10.0
libtpu: 0.0.40
codegen_flags: <defaults>
</compile_context>

<pallas_src>
import functools

import jax
import jax.numpy as jnp
from jax.experimental import pallas as pl
from jax.experimental.pallas import tpu as pltpu


def _embedding_gather_kernel(pos_ref, table_ref, o_ref, *, num_embeddings):
    # pos_ref:   (1, tile_l, 1) int32  -- precomputed, clamped positions
    # table_ref: (P, E)                -- VMEM-resident embedding table
    # o_ref:     (1, tile_l, E)        -- lane-dense output slab
    pos = pos_ref[0]                                   # (tile_l, 1)
    tile_l = pos.shape[0]

    # One-hot gather on the MXU.  The iota/compare is O(tile_l * P) VALU work,
    # cheap for the small P this module uses and fully hidden under the output
    # DMA; the O(tile_l^2) triangular prefix sum of v1 is gone entirely.
    p_iota = jax.lax.broadcasted_iota(jnp.int32, (tile_l, num_embeddings), 1)
    onehot = (pos == p_iota).astype(table_ref.dtype)   # 0/1 exact in bf16/f32
    out = jnp.dot(onehot, table_ref[...], preferred_element_type=jnp.float32)

    o_ref[0] = out.astype(o_ref.dtype)


def _round_up(x, m):
    return ((x + m - 1) // m) * m


def _vmem_working_set_bytes(tile_l, num_embeddings, emb_dim, itemsize):
    """Rough per-kernel VMEM footprint, padded to the (8, 128) tile grid."""
    e_pad = _round_up(emb_dim, 128)
    p_pad_sub = _round_up(num_embeddings, 8)
    p_pad_lane = _round_up(num_embeddings, 128)
    pos_tile = tile_l * 128 * 4                 # (tile_l, 1) i32 block pads to 128 lanes
    out_tile = tile_l * e_pad * itemsize
    table_buf = p_pad_sub * e_pad * itemsize
    onehot = tile_l * p_pad_lane * 4            # in-kernel intermediate (upper bound)
    return 2 * pos_tile + 2 * out_tile + 2 * table_buf + onehot


def chain_positional_embedding(chain_mask, emb_table, selected_chain_idx,
                               *, tile_l=1024):
    """chain_mask: (B, L) int; emb_table: (P, E); returns (B, L, E) in emb dtype."""
    B, L = chain_mask.shape
    P, E = emb_table.shape
    itemsize = jnp.dtype(emb_table.dtype).itemsize

    # ---- index computation (plain JAX; O(B*L) ints, negligible HBM traffic) ----
    mask = (chain_mask == int(selected_chain_idx)).astype(jnp.int32)
    positions = jnp.cumsum(mask, axis=1) * mask
    positions = jnp.minimum(positions, P - 1)   # clamp (jnp.take semantics; guards OOB one-hot)

    # ---- sequence tiling (big lane/sublane-dense output slabs per grid step) ----
    tile_l = max(8, _round_up(int(tile_l), 8))
    tile_l = min(tile_l, _round_up(L, 8))
    # Shrink until the working set fits comfortably under v7x's smaller VMEM.
    while tile_l > 8 and _vmem_working_set_bytes(tile_l, P, E, itemsize) > (20 << 20):
        tile_l = max(8, (tile_l // 2 // 8) * 8)
    Lp = _round_up(L, tile_l)
    n_l = Lp // tile_l
    if Lp != L:
        positions = jnp.pad(positions, ((0, 0), (0, Lp - L)))  # pads gather row 0; sliced off below
    pos3 = positions.reshape(B, Lp, 1).astype(jnp.int32)

    # Derived VMEM limit: actual need + 2x headroom, not a fixed 48 MiB.
    need = _vmem_working_set_bytes(tile_l, P, E, itemsize)
    vmem_limit = int(min(max(2 * need + (2 << 20), 8 << 20), 64 << 20))

    kernel = functools.partial(_embedding_gather_kernel, num_embeddings=P)

    def build(single_buffer_table):
        table_kwargs = {}
        if single_buffer_table:
            # Constant index_map -> fetched once; one buffer is enough
            # (saves a full P*E table copy of VMEM, matters most on v7x).
            table_kwargs["pipeline_mode"] = pl.Buffered(1)
        return pl.pallas_call(
            kernel,
            out_shape=jax.ShapeDtypeStruct((B, Lp, E), emb_table.dtype),
            grid_spec=pltpu.PrefetchScalarGridSpec(
                num_scalar_prefetch=0,
                grid=(B, n_l),
                in_specs=[
                    # positions column for this (batch, seq-tile)
                    pl.BlockSpec((1, tile_l, 1), lambda b, l: (b, l, 0)),
                    # resident embedding table (never re-DMA'd)
                    pl.BlockSpec((P, E), lambda b, l: (0, 0), **table_kwargs),
                ],
                # v5e note: with 128 MiB VMEM, pipeline_mode=pl.Buffered(3) here can
                # deepen output writeback overlap; left at default for portability.
                out_specs=pl.BlockSpec((1, tile_l, E), lambda b, l: (b, l, 0)),
            ),
            compiler_params=pltpu.CompilerParams(
                dimension_semantics=("parallel", "parallel"),
                vmem_limit_bytes=vmem_limit,
            ),
        )

    try:
        out = build(True)(pos3, emb_table)
    except Exception:
        # Fallback if pipeline_mode / Buffered(1) is rejected by this JAX build:
        # identical kernel, default (double-buffered) table spec.
        out = build(False)(pos3, emb_table)

    if Lp != L:
        out = out[:, :L, :]
    return out


def _reference(chain_mask, table, selected_idx):
    mask = (chain_mask == selected_idx).astype(jnp.int32)
    positions = jnp.cumsum(mask, axis=1) * mask
    return jnp.take(table, positions, axis=0)


if __name__ == "__main__":
    # Small shapes consistent with the module.
    B, L = 2, 24                   # batch, sequence length
    P, E = 32, 128                 # num_embeddings (max positions), embedding_dim
    SELECTED = 1                   # selected_chain_idx

    key = jax.random.PRNGKey(0)
    kc, kt = jax.random.split(key)

    chain_mask = jax.random.randint(kc, (B, L), 0, 3, dtype=jnp.int32)  # chain ids {0,1,2}
    emb_table = jax.random.normal(kt, (P, E), dtype=jnp.float32) * 0.02

    ref = _reference(chain_mask, emb_table, SELECTED)

    # Default path (tile_l clamped to the short toy sequence -> single tile).
    out = jax.block_until_ready(
        chain_positional_embedding(chain_mask, emb_table, SELECTED))
    assert out.shape == (B, L, E)
    assert jnp.allclose(out, ref, atol=1e-5, rtol=1e-5), "mismatch vs reference"

    # Multi-tile + tail-padding path (tile_l=16 -> Lp=32, two tiles per row).
    out2 = jax.block_until_ready(
        chain_positional_embedding(chain_mask, emb_table, SELECTED, tile_l=16))
    assert jnp.allclose(out2, ref, atol=1e-5, rtol=1e-5), "mismatch vs reference (tiled)"

    print("KERNEL_OK")
</pallas_src>

<mosaic_0001>
module attributes {stable_mosaic.version = 11 : i64} {
  func.func @_embedding_gather_kernel(%arg0: i32, %arg1: i32, %arg2: memref<1x24x1xi32, #tpu.memory_space<vmem>>, %arg3: memref<32x128xf32, #tpu.memory_space<vmem>>, %arg4: memref<1x24x128xf32, #tpu.memory_space<vmem>>) attributes {dimension_semantics = [#tpu.dimension_semantics<parallel>, #tpu.dimension_semantics<parallel>], iteration_bounds = array<i64: 2, 1>, scalar_prefetch = 0 : i64, scratch_operands = 0 : i64, tpu.core_type = #tpu.core_type<tc>, window_params = [{transform_indices = @transform_0, window_bounds = array<i64: 1, 24, 1>}, {pipeline_mode = #tpu.pipeline_mode<synchronous>, transform_indices = @transform_1, window_bounds = array<i64: 32, 128>}, {transform_indices = @transform_2, window_bounds = array<i64: 1, 24, 128>}]} {
    %c0 = arith.constant 0 : index
    %c0_0 = arith.constant 0 : index
    %c0_1 = arith.constant 0 : index
    %0 = vector.load %arg2[%c0, %c0_0, %c0_1] : memref<1x24x1xi32, #tpu.memory_space<vmem>>, vector<1x24x1xi32>
    %1 = vector.shape_cast %0 : vector<1x24x1xi32> to vector<24x1xi32>
    %2 = tpu.iota {dimensions = array<i32: 1>} : vector<24x32xi32>
    %3 = vector.broadcast %1 : vector<24x1xi32> to vector<24x32xi32>
    %4 = arith.cmpi eq, %3, %2 : vector<24x32xi32>
    %5 = arith.extui %4 : vector<24x32xi1> to vector<24x32xi32>
    %6 = arith.sitofp %5 : vector<24x32xi32> to vector<24x32xf32>
    %c0_2 = arith.constant 0 : index
    %c0_3 = arith.constant 0 : index
    %7 = vector.load %arg3[%c0_2, %c0_3] : memref<32x128xf32, #tpu.memory_space<vmem>>, vector<32x128xf32>
    %cst = arith.constant dense<0.000000e+00> : vector<24x128xf32>
    %8 = tpu.matmul %6, %7, %cst {dimension_numbers = #tpu.dot_dimension_numbers<[1], [0], [0], [1], [0, 0, 1, 1], [], []>} : vector<24x32xf32>, vector<32x128xf32>, vector<24x128xf32> -> vector<24x128xf32>
    %c0_4 = arith.constant 0 : index
    %c0_5 = arith.constant 0 : index
    %c0_6 = arith.constant 0 : index
    %9 = vector.load %arg4[%c0_4, %c0_5, %c0_6] : memref<1x24x128xf32, #tpu.memory_space<vmem>>, vector<1x24x128xf32>
    %10 = vector.shape_cast %9 : vector<1x24x128xf32> to vector<24x128xf32>
    %11 = vector.shape_cast %8 : vector<24x128xf32> to vector<1x24x128xf32>
    tpu.vector_store %arg4[%c0_4, %c0_5, %c0_6], %11 {strides = array<i32>} : memref<1x24x128xf32, #tpu.memory_space<vmem>>, vector<1x24x128xf32>,
    return
  }
  func.func @transform_0(%arg0: i32, %arg1: i32) -> (i32, i32, i32) {
    %c0_i32 = arith.constant 0 : i32
    %c0_i32_0 = arith.constant 0 : i32
    return %arg0, %arg1, %c0_i32 : i32, i32, i32
  }
  func.func @transform_1(%arg0: i32, %arg1: i32) -> (i32, i32) {
    %c0_i32 = arith.constant 0 : i32
    %c0_i32_0 = arith.constant 0 : i32
    %c0_i32_1 = arith.constant 0 : i32
    return %c0_i32, %c0_i32_0 : i32, i32
  }
  func.func @transform_2(%arg0: i32, %arg1: i32) -> (i32, i32, i32) {
    %c0_i32 = arith.constant 0 : i32
    %c0_i32_0 = arith.constant 0 : i32
    return %arg0, %arg1, %c0_i32 : i32, i32, i32
  }
}

module attributes {stable_mosaic.version = 11 : i64} {
  func.func @_embedding_gather_kernel(%arg0: i32, %arg1: i32, %arg2: memref<1x24x1xi32, #tpu.memory_space<vmem>>, %arg3: memref<32x128xf32, #tpu.memory_space<vmem>>, %arg4: memref<1x24x128xf32, #tpu.memory_space<vmem>>) attributes {dimension_semantics = [#tpu.dimension_semantics<parallel>, #tpu.dimension_semantics<parallel>], iteration_bounds = array<i64: 2, 1>, scalar_prefetch = 0 : i64, scratch_operands = 0 : i64, tpu.core_type = #tpu.core_type<tc>, window_params = [{transform_indices = @transform_0, window_bounds = array<i64: 1, 24, 1>}, {pipeline_mode = #tpu.pipeline_mode<synchronous>, transform_indices = @transform_1, window_bounds = array<i64: 32, 128>}, {transform_indices = @transform_2, window_bounds = array<i64: 1, 24, 128>}]} {
    %c0 = arith.constant 0 : index
    %c0_0 = arith.constant 0 : index
    %c0_1 = arith.constant 0 : index
    %0 = vector.load %arg2[%c0, %c0_0, %c0_1] : memref<1x24x1xi32, #tpu.memory_space<vmem>>, vector<1x24x1xi32>
    %1 = vector.shape_cast %0 : vector<1x24x1xi32> to vector<24x1xi32>
    %2 = tpu.iota {dimensions = array<i32: 1>} : vector<24x32xi32>
    %3 = vector.broadcast %1 : vector<24x1xi32> to vector<24x32xi32>
    %4 = arith.cmpi eq, %3, %2 : vector<24x32xi32>
    %5 = arith.extui %4 : vector<24x32xi1> to vector<24x32xi32>
    %6 = arith.sitofp %5 : vector<24x32xi32> to vector<24x32xf32>
    %c0_2 = arith.constant 0 : index
    %c0_3 = arith.constant 0 : index
    %7 = vector.load %arg3[%c0_2, %c0_3] : memref<32x128xf32, #tpu.memory_space<vmem>>, vector<32x128xf32>
    %cst = arith.constant dense<0.000000e+00> : vector<24x128xf32>
    %8 = tpu.matmul %6, %7, %cst {dimension_numbers = #tpu.dot_dimension_numbers<[1], [0], [0], [1], [0, 0, 1, 1], [], []>} : vector<24x32xf32>, vector<32x128xf32>, vector<24x128xf32> -> vector<24x128xf32>
    %c0_4 = arith.constant 0 : index
    %c0_5 = arith.constant 0 : index
    %c0_6 = arith.constant 0 : index
    %9 = vector.load %arg4[%c0_4, %c0_5, %c0_6] : memref<1x24x128xf32, #tpu.memory_space<vmem>>, vector<1x24x128xf32>
    %10 = vector.shape_cast %9 : vector<1x24x128xf32> to vector<24x128xf32>
    %11 = vector.shape_cast %8 : vector<24x128xf32> to vector<1x24x128xf32>
    tpu.vector_store %arg4[%c0_4, %c0_5, %c0_6], %11 {strides = array<i32>} : memref<1x24x128xf32, #tpu.memory_space<vmem>>, vector<1x24x128xf32>,
    return
  }
  func.func @transform_0(%arg0: i32, %arg1: i32) -> (i32, i32, i32) {
    %c0_i32 = arith.constant 0 : i32
    %c0_i32_0 = arith.constant 0 : i32
    return %arg0, %arg1, %c0_i32 : i32, i32, i32
  }
  func.func @transform_1(%arg0: i32, %arg1: i32) -> (i32, i32) {
    %c0_i32 = arith.constant 0 : i32
    %c0_i32_0 = arith.constant 0 : i32
    %c0_i32_1 = arith.constant 0 : i32
    return %c0_i32, %c0_i32_0 : i32, i32
  }
  func.func @transform_2(%arg0: i32, %arg1: i32) -> (i32, i32, i32) {
    %c0_i32 = arith.constant 0 : i32
    %c0_i32_0 = arith.constant 0 : i32
    return %arg0, %arg1, %c0_i32 : i32, i32, i32
  }
}

</mosaic_0001>

<bundles_post_ra>
// kernel: tpu_custom_call.1
= control target key start
LH: loop header
LB: loop body
LE: loop exit
PB: predicated region body
PF: predicated region fallthrough
CT: control target
= control target key end

     0   :  { %7 = vsyncpa [#allocation3], 0  ;;  %s728_s0 = inlined_call_operand.vmem [shape: s32[2,24,1], index: 0, kind: input, shape index: {}]   ;;  %s729_s1 = inlined_call_operand.vmem [shape: f32[32,128], index: 1, kind: input, shape index: {}]   ;;  %s730_s2 = inlined_call_operand.hbm [shape: f32[2,24,128], index: 2, kind: output, shape index: {}]  }
   0x1   :  { %9 = vsyncpa [#allocation3 + $0x1], 0  ;;  %s599_s9 = smov 0   ;;  %s601_s10 = smov 0  }
   0x2   :  { %s603_s11 = smov 0   ;;  %s605_s12 = smov 0  }
   0x3   :  { %s607_s13 = smov 0   ;;  %s609_s14 = smov 0  }
   0x4 LB: > { %s388_s15 = sadd.s32 4294967295, %s576_s14   ;;  %s389_s16 = sadd.s32 4294967294, %s576_s14   ;;  %s576_s14 = sphi %s609_s14, %s15_s14   ;;  %s572_s13 = sphi %s607_s13, %s737_s13   ;;  %s568_s12 = sphi %s605_s12, %s736_s12   ;;  %s564_s11 = sphi %s603_s11, %s735_s11   ;;  %s560_s10 = sphi %s601_s10, %s734_s10   ;;  %s556_s9 = sphi %s599_s9, %s733_s9  }
   0x5   : > { %s27_s17 = sadd.s32 1, %s572_s13  ;;  %s85_s18 = sadd.s32 1, %s564_s11 }
   0x6   : > { %p29_p0 = scmp.ge.s32.totalorder %s27_s17, 2  ;;  %p95_p1 = scmp.ne.s32.totalorder %s564_s11, %s560_s10 }
   0x7   : > { %p96_p2 = scmp.eq.s32.totalorder %s388_s15, 1  ;;  %p101_p3 = scmp.ne.s32.totalorder %s560_s10, %s556_s9 }
   0x8   : > { %s739_s17 = smov (%p29_p0, %s27_s17), 0  ;;  %p102_p5 = scmp.eq.s32.totalorder %s389_s16, 1 }
   0x9   : > { %p639_p4 = por %p96_p2, %p95_p1  ;;  %s80_s20 = ssub.s32 %s572_s13, %s739_s17 }
   0xa   : > { %p392_p6 = scmp.ge.s32.totalorder %s576_s14, 1  ;;  %p83_p7 = scmp.eq.s32.totalorder %s80_s20, 0 }
   0xb   : > { %p646_p8 = por %p102_p5, %p101_p3  ;;  %p136_p9 = scmp.lt.s32.totalorder %s576_s14, 3 }
   0xc   : > { %s652_s22 = scalar_select %p83_p7, %s564_s11, %s85_s18  }
   0xd   : > { %p137_p10 = pnand %p392_p6, %p136_p9 }
   0xe   : > { %p163_p11 = scmp.lt.s32.totalorder (!%p137_p10), %s568_s12, 1  ;;  %s159_s8 = sand.u32 (!%p137_p10), 1, %s560_s10  }
   0xf   : > { %140 = sbr.rel (%p137_p10) target bundleno = 366 (0x16e), region = 28  ;;  %s581_s27 = smov (!%p137_p10), [#allocation2]  }
  0x10   : > { %s435_s15 = smul.u32 (!%p137_p10), 24, %s159_s8 }
  0x11   : > { %s437_s16 = smul.u32 (!%p137_p10), 384, %s568_s12 }
  0x12   : > { %s161_s18 = scalar_lea.vmem (!%p137_p10), [#allocation2], %s435_s15 }
  0x13   : > { %s309_s20 = sshll.u32 (!%p137_p10), %s161_s18, 4  ;;  %s676_s20 = int_to_ptr.vmem [resolvable:$true] %s309_s20 }
  0x14   : > { %v199_v0 = vld [vmem:[%s729_s1 + $0x18] sm:$0xff]  ;;  %v578_v1 = vmov 0   ;;  %s164_s25 = scalar_select %p163_p11, %s568_s12, 1  ;;  %v579_v2 = vmov 0.0   ;;  %v198_v3 = vld [vmem:[%s729_s1 + $0x10] sm:$0xff]  ;;  %v197_v4 = vld [vmem:[%s729_s1 + $0x8] sm:$0xff]  ;;  %v176_v9 = vlaneseq }
  0x15   : > { %498 = vset.pattern.permute.xlu0 %v578_v1  ;;  %499 = vset.pattern.permute.xlu1 %v578_v1  ;;  %vm580_vm0 = vmmov 0   ;;  %v196_v7 = vld [vmem:[%s729_s1] sm:$0xff]  ;;  %vm200_vm1 = vcmask 261120   ;;  %s683_s12 = scalar_lea.sflag [#allocation3], %s159_s8  ;;  %s500_s26 = scalar_lea.vmem %s676_s20, 384 }
  0x16   : > { %427 = vmatprep.subr.mxu1 %v579_v2  ;;  %410 = vmatprep.subr.mxu0 %v579_v2  ;;  %s436_s28 = smul.u32 24, %s164_s25  ;;  %v177_v10 = vand.u32 127, %v176_v9  ;;  %s681_s25 = scalar_lea.hbm %s730_s2, %s437_s16 }
  0x17   : > { %431 = vmatpush3.msra.mxu1 %v199_v0  ;;  %411 = vmatpush3.msra.mxu0 %v199_v0  ;;  %p501_p12 = scmp.ne.s32.totalorder %s676_s20, %s500_s26 }
  0x18   : > { %428 = vmatprep.subr.mxu1 %v579_v2  ;;  %412 = vmatprep.subr.mxu0 %v579_v2  ;;  %s170_s5 = scalar_lea.vmem %s728_s0, %s436_s28  ;;  %s504_s28 = sshll.u32 %s581_s27, 4  ;;  %s505_s28 = int_to_ptr.vmem [resolvable:$false] %s504_s28 }
  0x19   : > { %432 = vmatpush3.msra.mxu1 %v198_v3  ;;  %413 = vmatpush3.msra.mxu0 %v198_v3  ;;  %v174_v5 = vld [vmem:[%s170_s5 + $0x8] sm:$0xff]  ;;  %v175_v6 = vld [vmem:[%s170_s5 + $0x10] sm:$0xff]  ;;  %v173_v8 = vld [vmem:[%s170_s5] sm:$0xff]  ;;  %p502_p13 = pnand %p501_p12, %p639_p4  ;;  %s506_s29 = scalar_lea.vmem %s505_s28, 768 }
  0x1a   : > { %429 = vmatprep.subr.mxu1 %v579_v2  ;;  %421 = vmatprep.mubr.msk.f32.mxu1 %vm580_vm0, %v579_v2  ;;  %p507_p1 = scmp.lt.s32.totalorder %s676_s20, %s505_s28  ;;  %p508_p2 = scmp.lt.s32.totalorder %s506_s29, %s500_s26 }
  0x1b   : > { %433 = vmatpush3.msra.mxu1 %v197_v4  ;;  %414 = vmatprep.subr.mxu0 %v579_v2  ;;  %p503_p0 = pneg %p502_p13 }
  0x1c   : > { %182 = vperm.xlu0 %498, %v174_v5   ;;  %185 = vperm.xlu1 %499, %v175_v6   ;;  %p509_p3 = por %p508_p2, %p507_p1 }
  0x1d   : > { %430 = vmatprep.subr.mxu1 %v579_v2  ;;  %415 = vmatpush3.msra.mxu0 %v197_v4 }
  0x1e   : > { %434 = vmatpush3.msra.mxu1 %v196_v7  ;;  %416 = vmatprep.subr.mxu0 %v579_v2  ;;  %p510_p5 = pnand %p509_p3, %p503_p0 }
  0x1f   : > { %417 = vmatpush3.msra.mxu0 %v196_v7  ;;  %418 = vmatprep.mubr.msk.f32.mxu0 %vm580_vm0, %v579_v2 }
  0x20   : > { %179 = vperm.xlu0 %498, %v173_v8  }
  0x97   : > { %v183_v11 = vpop.permute.xlu0 %182  ;;  %v186_v12 = vpop.permute.xlu1 %185 }
  0x98   : > { %vm188_vm2 = vcmp.eq.s32.totalorder %v183_v11, %v177_v10  ;;  %vm189_vm3 = vcmp.eq.s32.totalorder %v186_v12, %v177_v10 }
  0x99   : > { %v395_v13 = vsel %vm188_vm2, 1.0, %v579_v2  ;;  %v396_v14 = vsel %vm189_vm3, 1.0, %v579_v2 }
  0x9a   : > { %422 = vmatmul.mubr.msk.f32.vlgmr.msra.gmra.mxu1 %vm200_vm1, %v395_v13 }
  0x9b   : > { %v180_v15 = vpop.permute.xlu0 %179  ;;  %424 = vmatprep.mubr.msk.f32.mxu1 %vm580_vm0, %v579_v2 }
  0x9c   : > { %vm187_vm4 = vcmp.eq.s32.totalorder %v180_v15, %v177_v10 }
  0x9d   : > { %v394_v16 = vsel %vm187_vm4, 1.0, %v579_v2 }
  0x9e   : > { %419 = vmatmul.mubr.msk.f32.vlgmr.msra.gmra.mxu0 %vm200_vm1, %v394_v16  ;;  %425 = vmatmul.mubr.msk.f32.gmra.mxu1 %vm200_vm1, %v396_v14 }
 0x15a   : > { %v281_v17 = vpop.f32.mrf.mxu1 }
 0x15b   : > { %291 = vst [vmem:[%s161_s18 + $0x8] sm:$0xff] %v281_v17 }
 0x15c   : > { %v423_v18 = vpop.f32.mrf.mxu1 }
 0x15e   : > { %v276_v19 = vpop.f32.mrf.mxu0  ;;  %v286_v20 = vpop.f32.mrf.mxu1 }
 0x15f   : > { %290 = vst [vmem:[%s161_s18] sm:$0xff] %v276_v19  ;;  %292 = vst [vmem:[%s161_s18 + $0x10] sm:$0xff] %v286_v20 }
 0x160   : > { %v420_v21 = vpop.f32.mrf.mxu0  ;;  %v426_v22 = vpop.f32.mrf.mxu1 }
 0x161   : > { %513 = shalt.err (!%p510_p5)
}
 0x162   : > { %s514_s30 = scalar_lea.hbm %s681_s25, 384  ;;  %s518_s5 = scalar_lea.hbm %s730_s2, 768 }
 0x163   : > { %p515_p6 = scmp.ne.s32.totalorder %s681_s25, %s514_s30  ;;  %p519_p10 = scmp.lt.s32.totalorder %s681_s25, %s730_s2 }
 0x164   : > { %p520_p11 = scmp.lt.s32.totalorder %s518_s5, %s514_s30 }
 0x165   : > { %p516_p7 = pnand %p515_p6, %p639_p4 }
 0x166   : > { %p521_p12 = por %p520_p11, %p519_p10 }
 0x167   : > { %p517_p9 = pneg %p516_p7 }
 0x169   : > { %p522_p13 = pnand %p521_p12, %p517_p9 }
 0x16b   : > { %525 = shalt.err (!%p522_p13)
}
 0x16c   : > { %s582_s8 = smov 128   ;;  %s583_s15 = smov 8  }
 0x16d   : > { %438 = dma.vmem_to_hbm [thread:$0]  (%p639_p4), %s676_s20, 384, %s681_s25, %s683_s12, %s582_s8, %s582_s8, %s583_s15  }
 0x16e PF: > { %p444_p0 = scmp.ge.s32.totalorder %s576_s14, 2  ;;  %s324_s16 = sand.u32 1, %s556_s9  }
 0x16f   : > { %s325_s18 = scalar_lea.sflag [#allocation3], %s324_s16 }
 0x170   : > { %p441_p1 = pnand %p444_p0, %p646_p8 }
 0x172   : > { %p442_p2 = pneg %p441_p1 }
 0x174   : > { %551 = dma.done.wait (%p442_p2), %s325_s18, 384  }
 0x175   : > { %553 = vsyncadd (%p442_p2), %s325_s18, 4294966912  ;;  %s15_s14 = sadd.s32 1, %s576_s14   ;;  %s733_s9 = smov %s560_s10 }
 0x176   : > { %p12_p3 = scmp.ge.s32.totalorder %s15_s14, 4   ;;  %s734_s10 = smov %s564_s11 }
 0x177   : > { %s735_s11 = smov %s652_s22  ;;  %s736_s12 = smov %s572_s13 }
 0x178   : > { %s737_s13 = smov %s739_s17  ;;  %14 = sbr.rel (!%p12_p3) target bundleno = 4 (0x4), region = 63 }
 0x17d   :  { %330 = vsyncpa [#allocation3], 1 }
 0x17e   :  { %332 = vsyncpa [#allocation3 + $0x1], 1 }

// kernel: tpu_custom_call.1
= control target key start
LH: loop header
LB: loop body
LE: loop exit
PB: predicated region body
PF: predicated region fallthrough
CT: control target
= control target key end

     0   :  { %7 = vsyncpa [#allocation3], 0  ;;  %s728_s0 = inlined_call_operand.vmem [shape: s32[2,24,1], index: 0, kind: input, shape index: {}]   ;;  %s729_s1 = inlined_call_operand.vmem [shape: f32[32,128], index: 1, kind: input, shape index: {}]   ;;  %s730_s2 = inlined_call_operand.hbm [shape: f32[2,24,128], index: 2, kind: output, shape index: {}]  }
   0x1   :  { %9 = vsyncpa [#allocation3 + $0x1], 0  ;;  %s599_s9 = smov 0   ;;  %s601_s10 = smov 0  }
   0x2   :  { %s603_s11 = smov 0   ;;  %s605_s12 = smov 0  }
   0x3   :  { %s607_s13 = smov 0   ;;  %s609_s14 = smov 0  }
   0x4 LB: > { %s388_s15 = sadd.s32 4294967295, %s576_s14   ;;  %s389_s16 = sadd.s32 4294967294, %s576_s14   ;;  %s576_s14 = sphi %s609_s14, %s15_s14   ;;  %s572_s13 = sphi %s607_s13, %s737_s13   ;;  %s568_s12 = sphi %s605_s12, %s736_s12   ;;  %s564_s11 = sphi %s603_s11, %s735_s11   ;;  %s560_s10 = sphi %s601_s10, %s734_s10   ;;  %s556_s9 = sphi %s599_s9, %s733_s9  }
   0x5   : > { %s27_s17 = sadd.s32 1, %s572_s13  ;;  %s85_s18 = sadd.s32 1, %s564_s11 }
   0x6   : > { %p29_p0 = scmp.ge.s32.totalorder %s27_s17, 2  ;;  %p95_p1 = scmp.ne.s32.totalorder %s564_s11, %s560_s10 }
   0x7   : > { %p96_p2 = scmp.eq.s32.totalorder %s388_s15, 1  ;;  %p101_p3 = scmp.ne.s32.totalorder %s560_s10, %s556_s9 }
   0x8   : > { %s739_s17 = smov (%p29_p0, %s27_s17), 0  ;;  %p102_p5 = scmp.eq.s32.totalorder %s389_s16, 1 }
   0x9   : > { %p639_p4 = por %p96_p2, %p95_p1  ;;  %s80_s20 = ssub.s32 %s572_s13, %s739_s17 }
   0xa   : > { %p392_p6 = scmp.ge.s32.totalorder %s576_s14, 1  ;;  %p83_p7 = scmp.eq.s32.totalorder %s80_s20, 0 }
   0xb   : > { %p646_p8 = por %p102_p5, %p101_p3  ;;  %p136_p9 = scmp.lt.s32.totalorder %s576_s14, 3 }
   0xc   : > { %s652_s22 = scalar_select %p83_p7, %s564_s11, %s85_s18  }
   0xd   : > { %p137_p10 = pnand %p392_p6, %p136_p9 }
   0xe   : > { %p163_p11 = scmp.lt.s32.totalorder (!%p137_p10), %s568_s12, 1  ;;  %s159_s8 = sand.u32 (!%p137_p10), 1, %s560_s10  }
   0xf   : > { %140 = sbr.rel (%p137_p10) target bundleno = 366 (0x16e), region = 28  ;;  %s581_s27 = smov (!%p137_p10), [#allocation2]  }
  0x10   : > { %s435_s15 = smul.u32 (!%p137_p10), 24, %s159_s8 }
  0x11   : > { %s437_s16 = smul.u32 (!%p137_p10), 384, %s568_s12 }
  0x12   : > { %s161_s18 = scalar_lea.vmem (!%p137_p10), [#allocation2], %s435_s15 }
  0x13   : > { %s309_s20 = sshll.u32 (!%p137_p10), %s161_s18, 4  ;;  %s676_s20 = int_to_ptr.vmem [resolvable:$true] %s309_s20 }
  0x14   : > { %v199_v0 = vld [vmem:[%s729_s1 + $0x18] sm:$0xff]  ;;  %v578_v1 = vmov 0   ;;  %s164_s25 = scalar_select %p163_p11, %s568_s12, 1  ;;  %v579_v2 = vmov 0.0   ;;  %v198_v3 = vld [vmem:[%s729_s1 + $0x10] sm:$0xff]  ;;  %v197_v4 = vld [vmem:[%s729_s1 + $0x8] sm:$0xff]  ;;  %v176_v9 = vlaneseq }
  0x15   : > { %498 = vset.pattern.permute.xlu0 %v578_v1  ;;  %499 = vset.pattern.permute.xlu1 %v578_v1  ;;  %vm580_vm0 = vmmov 0   ;;  %v196_v7 = vld [vmem:[%s729_s1] sm:$0xff]  ;;  %vm200_vm1 = vcmask 261120   ;;  %s683_s12 = scalar_lea.sflag [#allocation3], %s159_s8  ;;  %s500_s26 = scalar_lea.vmem %s676_s20, 384 }
  0x16   : > { %427 = vmatprep.subr.mxu1 %v579_v2  ;;  %410 = vmatprep.subr.mxu0 %v579_v2  ;;  %s436_s28 = smul.u32 24, %s164_s25  ;;  %v177_v10 = vand.u32 127, %v176_v9  ;;  %s681_s25 = scalar_lea.hbm %s730_s2, %s437_s16 }
  0x17   : > { %431 = vmatpush3.msra.mxu1 %v199_v0  ;;  %411 = vmatpush3.msra.mxu0 %v199_v0  ;;  %p501_p12 = scmp.ne.s32.totalorder %s676_s20, %s500_s26 }
  0x18   : > { %428 = vmatprep.subr.mxu1 %v579_v2  ;;  %412 = vmatprep.subr.mxu0 %v579_v2  ;;  %s170_s5 = scalar_lea.vmem %s728_s0, %s436_s28  ;;  %s504_s28 = sshll.u32 %s581_s27, 4  ;;  %s505_s28 = int_to_ptr.vmem [resolvable:$false] %s504_s28 }
  0x19   : > { %432 = vmatpush3.msra.mxu1 %v198_v3  ;;  %413 = vmatpush3.msra.mxu0 %v198_v3  ;;  %v174_v5 = vld [vmem:[%s170_s5 + $0x8] sm:$0xff]  ;;  %v175_v6 = vld [vmem:[%s170_s5 + $0x10] sm:$0xff]  ;;  %v173_v8 = vld [vmem:[%s170_s5] sm:$0xff]  ;;  %p502_p13 = pnand %p501_p12, %p639_p4  ;;  %s506_s29 = scalar_lea.vmem %s505_s28, 768 }
  0x1a   : > { %429 = vmatprep.subr.mxu1 %v579_v2  ;;  %421 = vmatprep.mubr.msk.f32.mxu1 %vm580_vm0, %v579_v2  ;;  %p507_p1 = scmp.lt.s32.totalorder %s676_s20, %s505_s28  ;;  %p508_p2 = scmp.lt.s32.totalorder %s506_s29, %s500_s26 }
  0x1b   : > { %433 = vmatpush3.msra.mxu1 %v197_v4  ;;  %414 = vmatprep.subr.mxu0 %v579_v2  ;;  %p503_p0 = pneg %p502_p13 }
  0x1c   : > { %182 = vperm.xlu0 %498, %v174_v5   ;;  %185 = vperm.xlu1 %499, %v175_v6   ;;  %p509_p3 = por %p508_p2, %p507_p1 }
  0x1d   : > { %430 = vmatprep.subr.mxu1 %v579_v2  ;;  %415 = vmatpush3.msra.mxu0 %v197_v4 }
  0x1e   : > { %434 = vmatpush3.msra.mxu1 %v196_v7  ;;  %416 = vmatprep.subr.mxu0 %v579_v2  ;;  %p510_p5 = pnand %p509_p3, %p503_p0 }
  0x1f   : > { %417 = vmatpush3.msra.mxu0 %v196_v7  ;;  %418 = vmatprep.mubr.msk.f32.mxu0 %vm580_vm0, %v579_v2 }
  0x20   : > { %179 = vperm.xlu0 %498, %v173_v8  }
  0x97   : > { %v183_v11 = vpop.permute.xlu0 %182  ;;  %v186_v12 = vpop.permute.xlu1 %185 }
  0x98   : > { %vm188_vm2 = vcmp.eq.s32.totalorder %v183_v11, %v177_v10  ;;  %vm189_vm3 = vcmp.eq.s32.totalorder %v186_v12, %v177_v10 }
  0x99   : > { %v395_v13 = vsel %vm188_vm2, 1.0, %v579_v2  ;;  %v396_v14 = vsel %vm189_vm3, 1.0, %v579_v2 }
  0x9a   : > { %422 = vmatmul.mubr.msk.f32.vlgmr.msra.gmra.mxu1 %vm200_vm1, %v395_v13 }
  0x9b   : > { %v180_v15 = vpop.permute.xlu0 %179  ;;  %424 = vmatprep.mubr.msk.f32.mxu1 %vm580_vm0, %v579_v2 }
  0x9c   : > { %vm187_vm4 = vcmp.eq.s32.totalorder %v180_v15, %v177_v10 }
  0x9d   : > { %v394_v16 = vsel %vm187_vm4, 1.0, %v579_v2 }
  0x9e   : > { %419 = vmatmul.mubr.msk.f32.vlgmr.msra.gmra.mxu0 %vm200_vm1, %v394_v16  ;;  %425 = vmatmul.mubr.msk.f32.gmra.mxu1 %vm200_vm1, %v396_v14 }
 0x15a   : > { %v281_v17 = vpop.f32.mrf.mxu1 }
 0x15b   : > { %291 = vst [vmem:[%s161_s18 + $0x8] sm:$0xff] %v281_v17 }
 0x15c   : > { %v423_v18 = vpop.f32.mrf.mxu1 }
 0x15e   : > { %v276_v19 = vpop.f32.mrf.mxu0  ;;  %v286_v20 = vpop.f32.mrf.mxu1 }
 0x15f   : > { %290 = vst [vmem:[%s161_s18] sm:$0xff] %v276_v19  ;;  %292 = vst [vmem:[%s161_s18 + $0x10] sm:$0xff] %v286_v20 }
 0x160   : > { %v420_v21 = vpop.f32.mrf.mxu0  ;;  %v426_v22 = vpop.f32.mrf.mxu1 }
 0x161   : > { %513 = shalt.err (!%p510_p5)
}
 0x162   : > { %s514_s30 = scalar_lea.hbm %s681_s25, 384  ;;  %s518_s5 = scalar_lea.hbm %s730_s2, 768 }
 0x163   : > { %p515_p6 = scmp.ne.s32.totalorder %s681_s25, %s514_s30  ;;  %p519_p10 = scmp.lt.s32.totalorder %s681_s25, %s730_s2 }
 0x164   : > { %p520_p11 = scmp.lt.s32.totalorder %s518_s5, %s514_s30 }
 0x165   : > { %p516_p7 = pnand %p515_p6, %p639_p4 }
 0x166   : > { %p521_p12 = por %p520_p11, %p519_p10 }
 0x167   : > { %p517_p9 = pneg %p516_p7 }
 0x169   : > { %p522_p13 = pnand %p521_p12, %p517_p9 }
 0x16b   : > { %525 = shalt.err (!%p522_p13)
}
 0x16c   : > { %s582_s8 = smov 128   ;;  %s583_s15 = smov 8  }
 0x16d   : > { %438 = dma.vmem_to_hbm [thread:$0]  (%p639_p4), %s676_s20, 384, %s681_s25, %s683_s12, %s582_s8, %s582_s8, %s583_s15  }
 0x16e PF: > { %p444_p0 = scmp.ge.s32.totalorder %s576_s14, 2  ;;  %s324_s16 = sand.u32 1, %s556_s9  }
 0x16f   : > { %s325_s18 = scalar_lea.sflag [#allocation3], %s324_s16 }
 0x170   : > { %p441_p1 = pnand %p444_p0, %p646_p8 }
 0x172   : > { %p442_p2 = pneg %p441_p1 }
 0x174   : > { %551 = dma.done.wait (%p442_p2), %s325_s18, 384  }
 0x175   : > { %553 = vsyncadd (%p442_p2), %s325_s18, 4294966912  ;;  %s15_s14 = sadd.s32 1, %s576_s14   ;;  %s733_s9 = smov %s560_s10 }
 0x176   : > { %p12_p3 = scmp.ge.s32.totalorder %s15_s14, 4   ;;  %s734_s10 = smov %s564_s11 }
 0x177   : > { %s735_s11 = smov %s652_s22  ;;  %s736_s12 = smov %s572_s13 }
 0x178   : > { %s737_s13 = smov %s739_s17  ;;  %14 = sbr.rel (!%p12_p3) target bundleno = 4 (0x4), region = 63 }
 0x17d   :  { %330 = vsyncpa [#allocation3], 1 }
 0x17e   :  { %332 = vsyncpa [#allocation3 + $0x1], 1 }

</bundles_post_ra>
